<compile_context>
chip_gen: v7x
topology: tpu7x:2x2x1
jax: 0.10.0
libtpu: 0.0.40
codegen_flags: <defaults>
</compile_context>

<pallas_src>
import functools
import math

import jax
import jax.numpy as jnp
from jax.experimental import pallas as pl
from jax.experimental.pallas import tpu as pltpu


def _round_up(x, m):
    return (x + m - 1) // m * m


def _gru_cell_kernel(x_ref, h_ref, wih_ref, whh_ref, bx_ref, bhn_ref, out_ref, *, hp):
    """One batch tile of the GRU cell.

    x_ref   : (TM, I)      compute dtype (f32 or bf16)
    h_ref   : (TM, Hp)     float32 (lane-padded hidden state)
    wih_ref : (I,  3*Hp)   compute dtype, gate-padded [r | z | n]
    whh_ref : (Hp, 3*Hp)   compute dtype, gate-padded [r | z | n]
    bx_ref  : (1,  3*Hp)   float32, [b_ir+b_hr | b_iz+b_hz | b_in]
    bhn_ref : (1,  Hp)     float32, b_hn
    out_ref : (TM, Hp)     float32
    """
    x = x_ref[...]
    h = h_ref[...]                      # f32, reused for the z*h blend
    h_c = h.astype(x.dtype)             # MXU input dtype

    # MXU matmuls with f32 accumulation; r/z (and b_in) biases pre-folded.
    wi = jnp.dot(x, wih_ref[...], preferred_element_type=jnp.float32) + bx_ref[...]
    wh = jnp.dot(h_c, whh_ref[...], preferred_element_type=jnp.float32)

    # Gate slices start at multiples of Hp (multiple of 128) -> lane aligned.
    r = jax.nn.sigmoid(wi[:, :hp] + wh[:, :hp])
    z = jax.nn.sigmoid(wi[:, hp:2 * hp] + wh[:, hp:2 * hp])
    n = jnp.tanh(wi[:, 2 * hp:] + r * (wh[:, 2 * hp:] + bhn_ref[...]))

    out_ref[...] = ((1.0 - z) * n + z * h).astype(out_ref.dtype)


def gru_cell(input_, h_0, weight_ih, weight_hh, bias, *,
             compute_dtype=jnp.bfloat16, block_batch=256, donate_hidden=False):
    """Pallas GRU cell forward.

    input_:    (B, input_size) float32
    h_0:       (B, hidden_size) float32
    weight_ih: (input_size, 3*hidden_size) float32
    weight_hh: (hidden_size, 3*hidden_size) float32
    bias:      (6*hidden_size,) float32   [first 3H = bias_ih, last 3H = bias_hh]
    returns h_1: (B, hidden_size) float32
    """
    B, I = input_.shape
    Bh, H = h_0.shape
    assert Bh == B
    Hp = _round_up(H, 128)
    cd = jnp.dtype(compute_dtype)

    # ---- parameter prep: lane-pad each gate to Hp, fold r/z biases ----------
    w_ih_p = jnp.pad(weight_ih.reshape(I, 3, H), ((0, 0), (0, 0), (0, Hp - H)))
    w_ih_p = w_ih_p.reshape(I, 3 * Hp).astype(cd)
    w_hh_p = jnp.pad(weight_hh.reshape(H, 3, H),
                     ((0, Hp - H), (0, 0), (0, Hp - H)))
    w_hh_p = w_hh_p.reshape(Hp, 3 * Hp).astype(cd)

    b_ih = bias[:3 * H].reshape(3, H).astype(jnp.float32)
    b_hh = bias[3 * H:].reshape(3, H).astype(jnp.float32)
    b_x = jnp.stack([b_ih[0] + b_hh[0], b_ih[1] + b_hh[1], b_ih[2]])   # (3, H)
    b_x = jnp.pad(b_x, ((0, 0), (0, Hp - H))).reshape(1, 3 * Hp)
    b_hn = jnp.pad(b_hh[2][None, :], ((0, 0), (0, Hp - H)))            # (1, Hp)

    x_c = input_.astype(cd)
    h_pad = jnp.pad(h_0.astype(jnp.float32), ((0, 0), (0, Hp - H)))    # (B, Hp)

    # ---- batch tiling --------------------------------------------------------
    TM = B if B <= block_batch else block_batch
    grid = (pl.cdiv(B, TM),)

    in_specs = [
        pl.BlockSpec((TM, I), lambda i: (i, 0)),        # x  (streamed per tile)
        pl.BlockSpec((TM, Hp), lambda i: (i, 0)),       # h  (streamed per tile)
        pl.BlockSpec((I, 3 * Hp), lambda i: (0, 0)),    # W_ih (VMEM-resident)
        pl.BlockSpec((Hp, 3 * Hp), lambda i: (0, 0)),   # W_hh (VMEM-resident)
        pl.BlockSpec((1, 3 * Hp), lambda i: (0, 0)),    # folded bias
        pl.BlockSpec((1, Hp), lambda i: (0, 0)),        # b_hn
    ]
    out_spec = pl.BlockSpec((TM, Hp), lambda i: (i, 0))

    itemsize_c = cd.itemsize
    w_bytes = (w_ih_p.size + w_hh_p.size) * itemsize_c + (b_x.size + b_hn.size) * 4
    act_block_bytes = TM * I * itemsize_c + 2 * TM * Hp * 4
    vmem_limit = int(min(max(2 * (w_bytes + act_block_bytes) + (4 << 20),
                             32 << 20), 64 << 20))

    cost = pl.CostEstimate(
        flops=2 * B * (I + Hp) * 3 * Hp,
        transcendentals=3 * B * Hp,
        bytes_accessed=int(x_c.size * itemsize_c + w_bytes + 2 * B * Hp * 4),
    )

    kernel = functools.partial(_gru_cell_kernel, hp=Hp)

    out_pad = pl.pallas_call(
        kernel,
        out_shape=jax.ShapeDtypeStruct((B, Hp), jnp.float32),
        grid=grid,
        in_specs=in_specs,
        out_specs=out_spec,
        compiler_params=pltpu.CompilerParams(
            dimension_semantics=("parallel",),
            vmem_limit_bytes=vmem_limit,
        ),
        cost_estimate=cost,
        input_output_aliases={1: 0} if donate_hidden else {},
    )(x_c, h_pad, w_ih_p, w_hh_p, b_x, b_hn)

    return out_pad[:, :H].astype(h_0.dtype)


def gru_cell_ref(input_, h_0, weight_ih, weight_hh, bias):
    """Pure-JAX reference matching the PyTorch module semantics."""
    H = h_0.shape[1]
    bias_ih, bias_hh = bias[:3 * H], bias[3 * H:]
    wi_b = input_ @ weight_ih + bias_ih
    wh_b = h_0 @ weight_hh + bias_hh
    ri, zi, ni = wi_b[:, :H], wi_b[:, H:2 * H], wi_b[:, 2 * H:]
    rh, zh, nh = wh_b[:, :H], wh_b[:, H:2 * H], wh_b[:, 2 * H:]
    r = jax.nn.sigmoid(ri + rh)
    z = jax.nn.sigmoid(zi + zh)
    n = jnp.tanh(ni + r * nh)
    return (1.0 - z) * n + z * h_0


if __name__ == "__main__":
    batch, input_size, hidden_size = 2, 16, 32

    key = jax.random.PRNGKey(0)
    k_x, k_h, k_wih, k_whh, k_x2, k_h2 = jax.random.split(key, 6)

    # Deterministic parameter init mirroring reset_parameters():
    # weights ~ U(-stdv, stdv) with stdv = 1/sqrt(hidden_size); bias = 0.
    stdv = 1.0 / math.sqrt(hidden_size)
    weight_ih = jax.random.uniform(
        k_wih, (input_size, 3 * hidden_size), jnp.float32, -stdv, stdv)
    weight_hh = jax.random.uniform(
        k_whh, (hidden_size, 3 * hidden_size), jnp.float32, -stdv, stdv)
    bias = jnp.zeros((6 * hidden_size,), jnp.float32)

    x = jax.random.normal(k_x, (batch, input_size), jnp.float32)
    h0 = jax.random.normal(k_h, (batch, hidden_size), jnp.float32)

    ref = gru_cell_ref(x, h0, weight_ih, weight_hh, bias)

    # 1) f32 MXU-input path: tight agreement with the reference.
    h1_f32 = gru_cell(x, h0, weight_ih, weight_hh, bias, compute_dtype=jnp.float32)
    jax.block_until_ready(h1_f32)
    assert h1_f32.shape == (batch, hidden_size)
    assert jnp.allclose(h1_f32, ref, atol=1e-4, rtol=1e-4)

    # 2) Default bf16 MXU-input path (halves weight HBM bytes, f32 gate math).
    h1_bf16 = gru_cell(x, h0, weight_ih, weight_hh, bias)
    jax.block_until_ready(h1_bf16)
    assert jnp.allclose(h1_bf16, ref, atol=2e-2, rtol=2e-2)

    # 3) Larger batch: exercises the batch grid (2 tiles), the "parallel" axis
    #    and input/output aliasing of the (padded) hidden state.
    B2 = 512
    x2 = jax.random.normal(k_x2, (B2, input_size), jnp.float32)
    h02 = jax.random.normal(k_h2, (B2, hidden_size), jnp.float32)
    h1_big = gru_cell(x2, h02, weight_ih, weight_hh, bias,
                      compute_dtype=jnp.float32, donate_hidden=True)
    jax.block_until_ready(h1_big)
    ref_big = gru_cell_ref(x2, h02, weight_ih, weight_hh, bias)
    assert jnp.allclose(h1_big, ref_big, atol=1e-4, rtol=1e-4)

    print("KERNEL_OK")
</pallas_src>

<mosaic_0001>
module attributes {stable_mosaic.version = 11 : i64} {
  func.func @_gru_cell_kernel(%arg0: i32, %arg1: memref<2x16xf32, #tpu.memory_space<vmem>>, %arg2: memref<2x128xf32, #tpu.memory_space<vmem>>, %arg3: memref<16x384xf32, #tpu.memory_space<vmem>>, %arg4: memref<128x384xf32, #tpu.memory_space<vmem>>, %arg5: memref<1x384xf32, #tpu.memory_space<vmem>>, %arg6: memref<1x128xf32, #tpu.memory_space<vmem>>, %arg7: memref<2x128xf32, #tpu.memory_space<vmem>>) attributes {dimension_semantics = [#tpu.dimension_semantics<parallel>], iteration_bounds = array<i64: 1>, scalar_prefetch = 0 : i64, scratch_operands = 0 : i64, tpu.core_type = #tpu.core_type<tc>, window_params = [{transform_indices = @transform_0, window_bounds = array<i64: 2, 16>}, {transform_indices = @transform_1, window_bounds = array<i64: 2, 128>}, {pipeline_mode = #tpu.pipeline_mode<synchronous>, transform_indices = @transform_2, window_bounds = array<i64: 16, 384>}, {pipeline_mode = #tpu.pipeline_mode<synchronous>, transform_indices = @transform_3, window_bounds = array<i64: 128, 384>}, {pipeline_mode = #tpu.pipeline_mode<synchronous>, transform_indices = @transform_4, window_bounds = array<i64: 1, 384>}, {pipeline_mode = #tpu.pipeline_mode<synchronous>, transform_indices = @transform_5, window_bounds = array<i64: 1, 128>}, {transform_indices = @transform_6, window_bounds = array<i64: 2, 128>}]} {
    %c0 = arith.constant 0 : index
    %c0_0 = arith.constant 0 : index
    %0 = vector.load %arg1[%c0, %c0_0] : memref<2x16xf32, #tpu.memory_space<vmem>>, vector<2x16xf32>
    %c0_1 = arith.constant 0 : index
    %c0_2 = arith.constant 0 : index
    %1 = vector.load %arg2[%c0_1, %c0_2] : memref<2x128xf32, #tpu.memory_space<vmem>>, vector<2x128xf32>
    %c0_3 = arith.constant 0 : index
    %c0_4 = arith.constant 0 : index
    %2 = vector.load %arg3[%c0_3, %c0_4] : memref<16x384xf32, #tpu.memory_space<vmem>>, vector<16x384xf32>
    %cst = arith.constant dense<0.000000e+00> : vector<2x384xf32>
    %3 = tpu.matmul %0, %2, %cst {dimension_numbers = #tpu.dot_dimension_numbers<[1], [0], [0], [1], [0, 0, 1, 1], [], []>} : vector<2x16xf32>, vector<16x384xf32>, vector<2x384xf32> -> vector<2x384xf32>
    %c0_5 = arith.constant 0 : index
    %c0_6 = arith.constant 0 : index
    %4 = vector.load %arg5[%c0_5, %c0_6] : memref<1x384xf32, #tpu.memory_space<vmem>>, vector<1x384xf32>
    %5 = vector.broadcast %4 : vector<1x384xf32> to vector<2x384xf32>
    %6 = arith.addf %3, %5 : vector<2x384xf32>
    %c0_7 = arith.constant 0 : index
    %c0_8 = arith.constant 0 : index
    %7 = vector.load %arg4[%c0_7, %c0_8] : memref<128x384xf32, #tpu.memory_space<vmem>>, vector<128x384xf32>
    %cst_9 = arith.constant dense<0.000000e+00> : vector<2x384xf32>
    %8 = tpu.matmul %1, %7, %cst_9 {dimension_numbers = #tpu.dot_dimension_numbers<[1], [0], [0], [1], [0, 0, 1, 1], [], []>} : vector<2x128xf32>, vector<128x384xf32>, vector<2x384xf32> -> vector<2x384xf32>
    %9 = vector.extract_strided_slice %6 {offsets = [0, 0], sizes = [2, 128], strides = [1, 1]} : vector<2x384xf32> to vector<2x128xf32>
    %10 = vector.extract_strided_slice %8 {offsets = [0, 0], sizes = [2, 128], strides = [1, 1]} : vector<2x384xf32> to vector<2x128xf32>
    %11 = arith.addf %9, %10 : vector<2x128xf32>
    %12 = arith.negf %11 : vector<2x128xf32>
    %13 = math.exp %12 : vector<2x128xf32>
    %cst_10 = arith.constant 1.000000e+00 : f32
    %14 = vector.broadcast %cst_10 : f32 to vector<2x128xf32>
    %15 = arith.addf %14, %13 : vector<2x128xf32>
    %16 = arith.divf %14, %15 : vector<2x128xf32>
    %17 = vector.extract_strided_slice %6 {offsets = [0, 128], sizes = [2, 128], strides = [1, 1]} : vector<2x384xf32> to vector<2x128xf32>
    %18 = vector.extract_strided_slice %8 {offsets = [0, 128], sizes = [2, 128], strides = [1, 1]} : vector<2x384xf32> to vector<2x128xf32>
    %19 = arith.addf %17, %18 : vector<2x128xf32>
    %20 = arith.negf %19 : vector<2x128xf32>
    %21 = math.exp %20 : vector<2x128xf32>
    %cst_11 = arith.constant 1.000000e+00 : f32
    %22 = vector.broadcast %cst_11 : f32 to vector<2x128xf32>
    %23 = arith.addf %22, %21 : vector<2x128xf32>
    %24 = arith.divf %22, %23 : vector<2x128xf32>
    %25 = vector.extract_strided_slice %6 {offsets = [0, 256], sizes = [2, 128], strides = [1, 1]} : vector<2x384xf32> to vector<2x128xf32>
    %26 = vector.extract_strided_slice %8 {offsets = [0, 256], sizes = [2, 128], strides = [1, 1]} : vector<2x384xf32> to vector<2x128xf32>
    %c0_12 = arith.constant 0 : index
    %c0_13 = arith.constant 0 : index
    %27 = vector.load %arg6[%c0_12, %c0_13] : memref<1x128xf32, #tpu.memory_space<vmem>>, vector<1x128xf32>
    %28 = vector.broadcast %27 : vector<1x128xf32> to vector<2x128xf32>
    %29 = arith.addf %26, %28 : vector<2x128xf32>
    %30 = arith.mulf %16, %29 : vector<2x128xf32>
    %31 = arith.addf %25, %30 : vector<2x128xf32>
    %32 = math.tanh %31 : vector<2x128xf32>
    %cst_14 = arith.constant 1.000000e+00 : f32
    %33 = vector.broadcast %cst_14 : f32 to vector<2x128xf32>
    %34 = arith.subf %33, %24 : vector<2x128xf32>
    %35 = arith.mulf %34, %32 : vector<2x128xf32>
    %36 = arith.mulf %24, %1 : vector<2x128xf32>
    %37 = arith.addf %35, %36 : vector<2x128xf32>
    %c0_15 = arith.constant 0 : index
    %c0_16 = arith.constant 0 : index
    %38 = vector.load %arg7[%c0_15, %c0_16] : memref<2x128xf32, #tpu.memory_space<vmem>>, vector<2x128xf32>
    tpu.vector_store %arg7[%c0_15, %c0_16], %37 {strides = array<i32>} : memref<2x128xf32, #tpu.memory_space<vmem>>, vector<2x128xf32>,
    return
  }
  func.func @transform_0(%arg0: i32) -> (i32, i32) {
    %c0_i32 = arith.constant 0 : i32
    %c0_i32_0 = arith.constant 0 : i32
    return %arg0, %c0_i32 : i32, i32
  }
  func.func @transform_1(%arg0: i32) -> (i32, i32) {
    %c0_i32 = arith.constant 0 : i32
    %c0_i32_0 = arith.constant 0 : i32
    return %arg0, %c0_i32 : i32, i32
  }
  func.func @transform_2(%arg0: i32) -> (i32, i32) {
    %c0_i32 = arith.constant 0 : i32
    %c0_i32_0 = arith.constant 0 : i32
    %c0_i32_1 = arith.constant 0 : i32
    return %c0_i32, %c0_i32_0 : i32, i32
  }
  func.func @transform_3(%arg0: i32) -> (i32, i32) {
    %c0_i32 = arith.constant 0 : i32
    %c0_i32_0 = arith.constant 0 : i32
    %c0_i32_1 = arith.constant 0 : i32
    return %c0_i32, %c0_i32_0 : i32, i32
  }
  func.func @transform_4(%arg0: i32) -> (i32, i32) {
    %c0_i32 = arith.constant 0 : i32
    %c0_i32_0 = arith.constant 0 : i32
    %c0_i32_1 = arith.constant 0 : i32
    return %c0_i32, %c0_i32_0 : i32, i32
  }
  func.func @transform_5(%arg0: i32) -> (i32, i32) {
    %c0_i32 = arith.constant 0 : i32
    %c0_i32_0 = arith.constant 0 : i32
    %c0_i32_1 = arith.constant 0 : i32
    return %c0_i32, %c0_i32_0 : i32, i32
  }
  func.func @transform_6(%arg0: i32) -> (i32, i32) {
    %c0_i32 = arith.constant 0 : i32
    %c0_i32_0 = arith.constant 0 : i32
    return %arg0, %c0_i32 : i32, i32
  }
}

</mosaic_0001>

<bundles_post_ra>
// kernel: tpu_custom_call.1
= control target key start
LH: loop header
LB: loop body
LE: loop exit
PB: predicated region body
PF: predicated region fallthrough
CT: control target
= control target key end

     0   :  { %11 = vsyncpa [#allocation3], 0  ;;  %s839_s0 = inlined_call_operand.hbm [shape: f32[2,16], index: 0, kind: input, shape index: {}]   ;;  %s840_s1 = inlined_call_operand.vmem [shape: f32[2,128], index: 1, kind: input, shape index: {}]   ;;  %s841_s2 = inlined_call_operand.hbm [shape: f32[16,384], index: 2, kind: input, shape index: {}]   ;;  %s842_s3 = inlined_call_operand.hbm [shape: f32[128,384], index: 3, kind: input, shape index: {}]   ;;  %s843_s4 = inlined_call_operand.vmem [shape: f32[1,384], index: 4, kind: input, shape index: {}]   ;;  %s844_s5 = inlined_call_operand.vmem [shape: f32[1,128], index: 5, kind: input, shape index: {}]   ;;  %s845_s6 = inlined_call_operand.hbm [shape: f32[2,128], index: 6, kind: output, shape index: {}]  }
   0x1   :  { %12 = vsyncpa [#allocation6], 0 }
   0x2   :  { %13 = vsyncpa [#allocation4], 0  ;;  %s715_s21 = smov [#allocation5]   ;;  %s621_s25 = scalar_lea.hbm %s841_s2, 768 }
   0x3   :  { %s31_s22 = sshll.u32 %s715_s21, 4  ;;  %p622_p0 = scmp.ne.s32.totalorder %s841_s2, %s621_s25  ;;  %s32_s22 = int_to_ptr.vmem [resolvable:$true] %s31_s22 }
   0x4   :  { %p625_p1 = scmp.lt.u32.totalorder %s621_s25, %s841_s2 }
   0x6   :  { %p627_p2 = pnand %p625_p1, %p622_p0 }
   0x8   :  { %630 = shalt.err (!%p627_p2)
}
   0x9   :  { %s631_s30 = scalar_lea.vmem %s32_s22, 768  ;;  %p636_p4 = scmp.lt.s32.totalorder %s32_s22, %s32_s22 }
   0xa   :  { %p632_p3 = scmp.ne.s32.totalorder %s32_s22, %s631_s30  ;;  %p637_p5 = scmp.lt.s32.totalorder %s631_s30, %s631_s30 }
   0xc   :  { %p638_p6 = por %p637_p5, %p636_p4 }
   0xe   :  { %p639_p7 = pnand %p638_p6, %p632_p3 }
  0x10   :  { %642 = shalt.err (!%p639_p7)
}
  0x11   :  { %s716_s7 = smov 384   ;;  %s717_s8 = smov 24  }
  0x12   :  { %37 = dma.hbm_to_vmem [thread:$0]  %s841_s2, 768, %s32_s22, [#allocation6], %s716_s7, %s716_s7, %s717_s8  }
  0x13   :  { %s718_s11 = smov [#allocation2]   ;;  %s719_s13 = smov [#allocation7]  }
  0x14   :  { %s20_s12 = sshll.u32 %s718_s11, 4  ;;  %s43_s14 = sshll.u32 %s719_s13, 4  ;;  %s21_s12 = int_to_ptr.vmem [resolvable:$true] %s20_s12  ;;  %s44_s14 = int_to_ptr.vmem [resolvable:$true] %s43_s14 }
  0x15   :  { %s643_s17 = scalar_lea.hbm %s839_s0, 32 }
  0x16   :  { %p644_p8 = scmp.ne.s32.totalorder %s839_s0, %s643_s17  ;;  %p647_p9 = scmp.lt.u32.totalorder %s643_s17, %s839_s0 }
  0x18   :  { %p649_p10 = pnand %p647_p9, %p644_p8 }
  0x1a   :  { %652 = shalt.err (!%p649_p10)
}
  0x1b   :  { %s653_s2 = scalar_lea.vmem %s21_s12, 32  ;;  %p658_p12 = scmp.lt.s32.totalorder %s21_s12, %s21_s12 }
  0x1c   :  { %p654_p11 = scmp.ne.s32.totalorder %s21_s12, %s653_s2  ;;  %p659_p13 = scmp.lt.s32.totalorder %s653_s2, %s653_s2 }
  0x1e   :  { %p660_p0 = por %p659_p13, %p658_p12 }
  0x20   :  { %p661_p1 = pnand %p660_p0, %p654_p11 }
  0x22   :  { %664 = shalt.err (!%p661_p1)
}
  0x23   :  { %23 = dma.hbm_to_vmem [thread:$0]  %s839_s0, 32, %s21_s12, [#allocation3]  }
  0x24   :  { %s665_s26 = scalar_lea.hbm %s842_s3, 6144 }
  0x25   :  { %p666_p2 = scmp.ne.s32.totalorder %s842_s3, %s665_s26  ;;  %p669_p3 = scmp.lt.u32.totalorder %s665_s26, %s842_s3 }
  0x27   :  { %p671_p4 = pnand %p669_p3, %p666_p2 }
  0x29   :  { %674 = shalt.err (!%p671_p4)
}
  0x2a   :  { %s675_s9 = scalar_lea.vmem %s44_s14, 6144  ;;  %p680_p6 = scmp.lt.s32.totalorder %s44_s14, %s44_s14 }
  0x2b   :  { %p676_p5 = scmp.ne.s32.totalorder %s44_s14, %s675_s9  ;;  %p681_p7 = scmp.lt.s32.totalorder %s675_s9, %s675_s9 }
  0x2d   :  { %p682_p8 = por %p681_p7, %p680_p6 }
  0x2f   :  { %p683_p9 = pnand %p682_p8, %p676_p5 }
  0x31   :  { %686 = shalt.err (!%p683_p9)
}
  0x32   :  { %49 = dma.hbm_to_vmem [thread:$0]  %s842_s3, 6144, %s44_s14, [#allocation6], %s716_s7, %s716_s7, %s717_s8  }
  0x33   :  { %709 = dma.done.wait [#allocation3], 32  }
  0x34   :  { %710 = vsyncadd [#allocation3], 4294967264 }
  0x35   :  { %711 = dma.done.wait [#allocation6], 6912  }
  0x36   :  { %712 = vsyncadd [#allocation6], 4294960384  ;;  %v720_v0 = vmov 0.0   ;;  %v721_v1 = vmov 0.0|0.0   ;;  %vm722_vm0 = vmmov 0   ;;  %v66_v2 = vld [vmem:[#allocation5 + $0x8] sm:$0xff] }
  0x37   :  { %156 = vmatprep.mubr.f32.mxu0 %v720_v0  ;;  %539 = vmatprep.subr.bf16.mxu1 %v721_v1  ;;  %v69_v3 = vld [vmem:[#allocation5 + $0x20] sm:$0xff]  ;;  %v68_v6 = vld [vmem:[#allocation5 + $0x18] sm:$0xff]  ;;  %v237_v8 = vld [vmem:[#allocation7 + $0x20] sm:$0xff]  ;;  %vm88_vm1 = vcmask 130048   ;;  %s723_s12 = smov [#allocation8]  }
  0x38   :  { %497 = vmatprep.mubr.msk.f32.mxu1 %vm722_vm0, %v720_v0  ;;  %v65_v4 = vld [vmem:[#allocation5] sm:$0xff]  ;;  %v535_v5 = vpack.c.bf16 %v69_v3, %v66_v2  ;;  %v234_v7 = vld [vmem:[#allocation7 + $0x8] sm:$0xff]  ;;  %v233_v11 = vld [vmem:[#allocation7] sm:$0xff]  ;;  %s458_s13 = sshll.u32 %s723_s12, 4  ;;  %s459_s13 = int_to_ptr.vmem [resolvable:$true] %s458_s13 }
  0x39   :  { %v537_v9 = vpack.c.bf16 %v68_v6, %v65_v4  ;;  %v542_v10 = vpack.c.bf16 %v237_v8, %v234_v7  ;;  %v236_v12 = vld [vmem:[#allocation7 + $0x18] sm:$0xff]  ;;  %v243_v14 = vld [vmem:[#allocation7 + $0x50] sm:$0xff]  ;;  %v63_v15 = vld [vmem:[#allocation2] sm:$0x3]  ;;  %p692_p11 = scmp.lt.s32.totalorder %s459_s13, %s459_s13 }
  0x3a   :  { %536 = vmatprep.subr.bf16.mxu0 %v535_v5  ;;  %v240_v13 = vld [vmem:[#allocation7 + $0x38] sm:$0xff]  ;;  %v544_v16 = vpack.c.bf16 %v236_v12, %v233_v11  ;;  %v239_v18 = vld [vmem:[#allocation7 + $0x30] sm:$0xff]  ;;  %v242_v19 = vld [vmem:[#allocation7 + $0x48] sm:$0xff] }
  0x3b   :  { %538 = vmatpush1.bf16.msra.mxu0 %v537_v9  ;;  %v546_v17 = vpack.c.bf16 %v243_v14, %v240_v13  ;;  %v246_v20 = vld [vmem:[#allocation7 + $0x68] sm:$0xff]  ;;  %v249_v21 = vld [vmem:[#allocation7 + $0x80] sm:$0xff]  ;;  %v548_v22 = vpack.c.bf16 %v242_v19, %v239_v18  ;;  %v248_v25 = vld [vmem:[#allocation7 + $0x78] sm:$0xff] }
  0x3c   :  { %543 = vmatprep.subr.bf16.mxu0 %v542_v10  ;;  %v550_v23 = vpack.c.bf16 %v249_v21, %v246_v20  ;;  %v245_v24 = vld [vmem:[#allocation7 + $0x60] sm:$0xff]  ;;  %v252_v27 = vld [vmem:[#allocation7 + $0x98] sm:$0xff]  ;;  %v255_v28 = vld [vmem:[#allocation7 + $0xb0] sm:$0xff] }
  0x3d   :  { %v67_v26 = vld [vmem:[#allocation5 + $0x10] sm:$0xff]  ;;  %v70_v29 = vld [vmem:[#allocation5 + $0x28] sm:$0xff]  ;;  %v235_v31 = vld [vmem:[#allocation7 + $0x10] sm:$0xff]  ;;  %v552_v32 = vpack.c.bf16 %v248_v25, %v245_v24  ;;  %v554_v34 = vpack.c.bf16 %v255_v28, %v252_v27  ;;  %v73_v24 = vlaneseq }
  0x3e   :  { %468 = vmatmul.mubr.msk.f32.vlgmr.msra.gmra.mrb[0].mxu0 %vm88_vm1, %v63_v15  ;;  %v540_v30 = vpack.c.bf16 %v70_v29, %v67_v26  ;;  %v238_v33 = vld [vmem:[#allocation7 + $0x28] sm:$0xff]  ;;  %v251_v35 = vld [vmem:[#allocation7 + $0x90] sm:$0xff]  ;;  %v261_v39 = vld [vmem:[#allocation7 + $0xe0] sm:$0xff] }
  0x3f   :  { %545 = vmatpush1.bf16.msra.mxu0 %v544_v16  ;;  %345 = vmatprep.mubr.f32.mxu0 %v720_v0  ;;  %v254_v36 = vld [vmem:[#allocation7 + $0xa8] sm:$0xff]  ;;  %v575_v38 = vpack.c.bf16 %v238_v33, %v235_v31  ;;  %v241_v40 = vld [vmem:[#allocation7 + $0x40] sm:$0xff]  ;;  %v244_v41 = vld [vmem:[#allocation7 + $0x58] sm:$0xff]  ;;  %v74_v25 = vshrl.u32 %v73_v24, 7 }
  0x40   :  { %547 = vmatprep.subr.bf16.mxu0 %v546_v17  ;;  %v258_v37 = vld [vmem:[#allocation7 + $0xc8] sm:$0xff]  ;;  %541 = vmatpush3.bf16.msra.mxu1 %v540_v30  ;;  %v556_v42 = vpack.c.bf16 %v254_v36, %v251_v35  ;;  %v257_v44 = vld [vmem:[#allocation7 + $0xc0] sm:$0xff]  ;;  %v260_v45 = vld [vmem:[#allocation7 + $0xd8] sm:$0xff]  ;;  %v578_v47 = vpack.c.bf16 %v244_v41, %v241_v40 }
  0x41   :  { %574 = vmatprep.subr.bf16.mxu1 %v721_v1  ;;  %v558_v43 = vpack.c.bf16 %v261_v39, %v258_v37  ;;  %v264_v46 = vld [vmem:[#allocation7 + $0xf8] sm:$0xff]  ;;  %v267_v48 = vld [vmem:[#allocation7 + $0x110] sm:$0xff]  ;;  %v250_v50 = vld [vmem:[#allocation7 + $0x88] sm:$0xff]  ;;  %v560_v51 = vpack.c.bf16 %v260_v45, %v257_v44  ;;  %v75_v26 = vsub.s32 0, %v74_v25  ;;  %v79_v28 = vsub.s32 1, %v74_v25 }
  0x42   :  { %v247_v49 = vld [vmem:[#allocation7 + $0x70] sm:$0xff]  ;;  %v562_v52 = vpack.c.bf16 %v267_v48, %v264_v46  ;;  %v266_v54 = vld [vmem:[#allocation7 + $0x108] sm:$0xff]  ;;  %v273_v57 = vld [vmem:[#allocation7 + $0x140] sm:$0xff]  ;;  %v83_v40 = vsub.s32 2, %v74_v25 }
  0x43   :  { %549 = vmatpush1.bf16.msra.mxu0 %v548_v22  ;;  %498 = vmatmul.mubr.msk.f32.vlgmr.msra.gmra.mrb[0].mxu1 %vm88_vm1, %v63_v15  ;;  %v263_v53 = vld [vmem:[#allocation7 + $0xf0] sm:$0xff]  ;;  %v270_v55 = vld [vmem:[#allocation7 + $0x128] sm:$0xff]  ;;  %v581_v56 = vpack.c.bf16 %v250_v50, %v247_v49  ;;  %v253_v58 = vld [vmem:[#allocation7 + $0xa0] sm:$0xff] }
  0x44   :  { %551 = vmatprep.subr.bf16.mxu0 %v550_v23  ;;  %576 = vmatpush3.bf16.msra.mxu1 %v575_v38  ;;  %v256_v59 = vld [vmem:[#allocation7 + $0xb8] sm:$0xff]  ;;  %v564_v60 = vpack.c.bf16 %v266_v54, %v263_v53  ;;  %v566_v61 = vpack.c.bf16 %v273_v57, %v270_v55  ;;  %v269_v62 = vld [vmem:[#allocation7 + $0x120] sm:$0xff]  ;;  %v279_v3 = vld [vmem:[#allocation7 + $0x170] sm:$0xff] }
  0x45   :  { %577 = vmatprep.subr.bf16.mxu1 %v721_v1  ;;  %532 = vmatprep.mubr.msk.f32.mxu1 %vm722_vm0, %v720_v0  ;;  %v272_v63 = vld [vmem:[#allocation7 + $0x138] sm:$0xff]  ;;  %v584_v2 = vpack.c.bf16 %v256_v59, %v253_v58  ;;  %v259_v4 = vld [vmem:[#allocation7 + $0xd0] sm:$0xff]  ;;  %v262_v5 = vld [vmem:[#allocation7 + $0xe8] sm:$0xff] }
  0x46   :  { %v276_v0 = vld [vmem:[#allocation7 + $0x158] sm:$0xff]  ;;  %v568_v6 = vpack.c.bf16 %v272_v63, %v269_v62  ;;  %v275_v8 = vld [vmem:[#allocation7 + $0x150] sm:$0xff]  ;;  %v278_v9 = vld [vmem:[#allocation7 + $0x168] sm:$0xff]  ;;  %v587_v10 = vpack.c.bf16 %v262_v5, %v259_v4 }
  0x47   :  { %553 = vmatpush1.bf16.msra.mxu0 %v552_v32  ;;  %v570_v7 = vpack.c.bf16 %v279_v3, %v276_v0  ;;  %v265_v11 = vld [vmem:[#allocation7 + $0x100] sm:$0xff]  ;;  %v268_v12 = vld [vmem:[#allocation7 + $0x118] sm:$0xff]  ;;  %v572_v13 = vpack.c.bf16 %v278_v9, %v275_v8  ;;  %v271_v15 = vld [vmem:[#allocation7 + $0x130] sm:$0xff] }
  0x48   :  { %555 = vmatprep.subr.bf16.mxu0 %v554_v34  ;;  %579 = vmatpush3.bf16.msra.mxu1 %v578_v47  ;;  %v590_v14 = vpack.c.bf16 %v268_v12, %v265_v11  ;;  %v274_v16 = vld [vmem:[#allocation7 + $0x148] sm:$0xff]  ;;  %v64_v17 = vld [vmem:[%s840_s1] sm:$0x3]  ;;  %v280_v20 = vld [vmem:[#allocation7 + $0x178] sm:$0xff] }
  0x49   :  { %580 = vmatprep.subr.bf16.mxu1 %v721_v1  ;;  %v593_v18 = vpack.c.bf16 %v274_v16, %v271_v15  ;;  %v277_v19 = vld [vmem:[#allocation7 + $0x160] sm:$0xff] }
  0x4a   :  { %v596_v21 = vpack.c.bf16 %v280_v20, %v277_v19  ;;  %v71_v27 = vld [vmem:[%s843_s4] sm:$0x7] }
  0x4b   :  { %557 = vmatpush1.bf16.msra.mxu0 %v556_v42  ;;  %v76_v29 = vrot.slane %v71_v27, %v75_v26  ;;  %v80_v31 = vrot.slane %v71_v27, %v79_v28  ;;  %v472_v42 = vld [vmem:[%s844_s5] ss:$0 sm:$0xff]  ;;  %s687_s5 = scalar_lea.vmem %s459_s13, 32 }
  0x4c   :  { %559 = vmatprep.subr.bf16.mxu0 %v558_v43  ;;  %582 = vmatpush3.bf16.msra.mxu1 %v581_v56  ;;  %v84_v43 = vrot.slane %v71_v27, %v83_v40  ;;  %p688_p10 = scmp.ne.s32.totalorder %s459_s13, %s687_s5  ;;  %p693_p12 = scmp.lt.s32.totalorder %s687_s5, %s687_s5 }
  0x4d   :  { %583 = vmatprep.subr.bf16.mxu1 %v721_v1 }
  0x4e   :  { %p694_p13 = por %p693_p12, %p692_p11 }
  0x4f   :  { %561 = vmatpush1.bf16.msra.mxu0 %v560_v51 }
  0x50   :  { %563 = vmatprep.subr.bf16.mxu0 %v562_v52  ;;  %585 = vmatpush3.bf16.msra.mxu1 %v584_v2  ;;  %p695_p0 = pnand %p694_p13, %p688_p10 }
  0x51   :  { %586 = vmatprep.subr.bf16.mxu1 %v721_v1 }
  0x53   :  { %565 = vmatpush1.bf16.msra.mxu0 %v564_v60 }
  0x54   :  { %567 = vmatprep.subr.bf16.mxu0 %v566_v61  ;;  %588 = vmatpush3.bf16.msra.mxu1 %v587_v10 }
  0x55   :  { %589 = vmatprep.subr.bf16.mxu1 %v721_v1 }
  0x57   :  { %569 = vmatpush1.bf16.msra.mxu0 %v568_v6 }
  0x58   :  { %571 = vmatprep.subr.bf16.mxu0 %v570_v7  ;;  %591 = vmatpush3.bf16.msra.mxu1 %v590_v14 }
  0x59   :  { %592 = vmatprep.subr.bf16.mxu1 %v721_v1 }
  0x5b   :  { %573 = vmatpush1.bf16.msra.mxu0 %v572_v13 }
  0x5c   :  { %594 = vmatpush3.bf16.msra.mxu1 %v593_v18 }
  0x5d   :  { %595 = vmatprep.subr.bf16.mxu1 %v721_v1 }
  0x5e   :  { %346 = vmatmul.mubr.f32.vlgmr.msra.gmra.mrb[0].mxu0 %v64_v17 }
  0x60   :  { %597 = vmatpush3.bf16.msra.mxu1 %v596_v21 }
  0x63   :  { %533 = vmatmul.mubr.f32.vlgmr.msra.gmra.mrb[2].mxu1 %v64_v17 }
 0x116   :  { %v229_v22 = vpop.f32.mrb[0].mxu1 }
 0x117   :  { %v499_v23 = vpop.f32.mrb[1].mxu1  ;;  %v230_v47 = vadd.f32 %v229_v22, %v84_v43 }
 0x131   :  { %v347_v30 = vpop.f32.mrb[0].mxu0 }
 0x132   :  { %v598_v32 = vadd.f32 %v347_v30, %v76_v29  ;;  %v349_v33 = vpop.f32.mrb[1].mxu0 }
 0x133   :  { %v599_v35 = vadd.f32 %v349_v33, %v80_v31 }
 0x134   :  { %v470_v34 = vmul.f32 -1.442695, %v598_v32 }
 0x135   :  { %v471_v1 = vmul.f32 -1.442695, %v599_v35 }
 0x136   :  { %611 = vpow2.f32 %v470_v34  ;;  %v418_v36 = vpop.f32.mrb[2].mxu1 }
 0x137   :  { %v534_v37 = vpop.f32.mrb[3].mxu1  ;;  %613 = vpow2.f32 %v471_v1  ;;  %v443_v45 = vadd.f32 %v472_v42, %v418_v36 }
 0x140   :  { %v612_v38 = vpop.eup %611 }
 0x141   :  { %v426_v39 = vadd.f32 1.0, %v612_v38  ;;  %v614_v41 = vpop.eup %613 }
 0x142   :  { %v433_v44 = vadd.f32 1.0, %v614_v41 }
 0x143   :  { %615 = vrcp.f32 %v426_v39 }
 0x144   :  { %617 = vrcp.f32 %v433_v44 }
 0x14d   :  { %v616_v46 = vpop.eup %615 }
 0x14e   :  { %v444_v48 = vmul.f32 %v616_v46, %v443_v45  ;;  %v618_v50 = vpop.eup %617 }
 0x14f   :  { %v447_v51 = vsub.f32 1.0, %v618_v50  ;;  %v449_v54 = vmul.f32 %v618_v50, %v64_v17 }
 0x150   :  { %v445_v49 = vadd.f32 %v444_v48, %v230_v47 }
 0x152   :  { %619 = vtanh.f32 %v445_v49 }
 0x15c   :  { %v620_v52 = vpop.eup %619 }
 0x15d   :  { %v448_v53 = vmul.f32 %v620_v52, %v447_v51 }
 0x15f   :  { %v450_v55 = vadd.f32 %v449_v54, %v448_v53 }
 0x161   :  { %451 = vst [vmem:[#allocation8] sm:$0x3] %v450_v55 }
 0x162   :  { %698 = shalt.err (!%p695_p0)
}
 0x163   :  { %s699_s16 = scalar_lea.hbm %s845_s6, 32 }
 0x164   :  { %p700_p1 = scmp.ne.s32.totalorder %s845_s6, %s699_s16  ;;  %p703_p2 = scmp.lt.u32.totalorder %s699_s16, %s845_s6 }
 0x166   :  { %p705_p3 = pnand %p703_p2, %p700_p1 }
 0x168   :  { %708 = shalt.err (!%p705_p3)
}
 0x169   :  { %461 = dma.vmem_to_hbm [thread:$0]  %s459_s13, 32, %s845_s6, [#allocation4]  }
 0x16a   :  { %713 = dma.done.wait [#allocation4], 32  }
 0x16b   :  { %714 = vsyncadd [#allocation4], 4294967264 }
 0x16c   :  { %465 = vsyncpa [#allocation3], 1 }
 0x16d   :  { %466 = vsyncpa [#allocation6], 1 }
 0x16e   :  { %467 = vsyncpa [#allocation4], 1 }

</bundles_post_ra>
